<compile_context>
chip_gen: v7x
topology: tpu7x:2x2x1
jax: 0.10.0
libtpu: 0.0.40
codegen_flags: <defaults>
</compile_context>

<pallas_src>
import jax
import jax.numpy as jnp
from jax.experimental import pallas as pl
from jax.experimental.pallas import tpu as pltpu

_LANES = 128
_MAX_BLOCK_BYTES = 512 * 1024  # per-block VMEM target (x4 with in/out double-buffering)


def _round_up(a, m):
    return ((a + m - 1) // m) * m


class BaseEmbedder:
    """JAX/Pallas port of the PyTorch BaseEmbedder."""

    def __init__(self, N_joints=24, N_dims=3, skel_type=None):
        self.N_joints = N_joints
        self.N_dims = N_dims
        self.skel_type = skel_type
        # BaseEmbedder has no learnable parameters.

    @property
    def dims(self):
        return self.N_joints * self.N_dims

    @property
    def encoder_name(self):
        return self.__class__.__name__

    def __repr__(self):
        return (f'{self.encoder_name}(N_joints={self.N_joints}, '
                f'N_dims={self.N_dims})')

    # ---- Pallas kernel -----------------------------------------------------
    @staticmethod
    def _embed_kernel(x_ref, o_ref):
        # Identity embedding on a lane-dense (block_rows, 128) tile.
        # Subclasses with real math (sin/cos/exp encodings, MLP embeds, ...)
        # fuse their per-element work here instead of a second XLA op.
        o_ref[...] = x_ref[...]

    def __call__(self, x):
        """x: (B, N_joints, N_dims) -> (B, N_joints*N_dims), same dtype."""
        B = x.shape[0]
        assert x.shape[1] == self.N_joints and x.shape[2] == self.N_dims, (
            f'expected (B, {self.N_joints}, {self.N_dims}), got {x.shape}')

        dims = self.dims
        total = B * dims

        # ---- Lane-dense repack: flat slab with a 128-wide last dim ---------
        itemsize = jnp.dtype(x.dtype).itemsize
        # Sublane packing minimum: 8 for 32-bit, 16 for bf16, 32 for int8/fp8.
        min_sublane = 8 * max(1, 4 // max(1, itemsize))
        # Dtype-aware row cap so a block stays ~_MAX_BLOCK_BYTES regardless of dtype.
        max_block_rows = max(min_sublane,
                             _round_up(_MAX_BLOCK_BYTES // (_LANES * itemsize),
                                       min_sublane))

        rows = pl.cdiv(total, _LANES)
        block_rows = min(max_block_rows, _round_up(rows, min_sublane))
        padded_rows = _round_up(rows, block_rows)
        pad = padded_rows * _LANES - total

        x_flat = x.reshape(total)
        if pad:
            x_flat = jnp.pad(x_flat, (0, pad))
        x2d = x_flat.reshape(padded_rows, _LANES)

        grid = (padded_rows // block_rows,)

        out2d = pl.pallas_call(
            self._embed_kernel,
            out_shape=jax.ShapeDtypeStruct((padded_rows, _LANES), x2d.dtype),
            grid=grid,
            in_specs=[pl.BlockSpec((block_rows, _LANES), lambda i: (i, 0))],
            out_specs=pl.BlockSpec((block_rows, _LANES), lambda i: (i, 0)),
            # Output aliases the (temporary) padded input slab: no second HBM
            # allocation for an identity pass.
            input_output_aliases={0: 0},
            compiler_params=pltpu.CompilerParams(
                dimension_semantics=("parallel",),
                vmem_limit_bytes=8 * 1024 * 1024,
            ),
        )(x2d)

        # Free metadata reshapes back to the reference (B, dims) layout.
        return out2d.reshape(padded_rows * _LANES)[:total].reshape(B, dims)


if __name__ == "__main__":
    key = jax.random.PRNGKey(0)

    embedder = BaseEmbedder(N_joints=24, N_dims=3)

    # Case 1: small batch, total elements NOT a multiple of 128 (pad path).
    B1 = 8
    x1 = jax.random.normal(key, (B1, 24, 3), dtype=jnp.float32)
    out1 = jax.block_until_ready(embedder(x1))
    ref1 = x1.reshape(B1, embedder.dims)
    assert out1.shape == (B1, embedder.dims), out1.shape
    assert jnp.allclose(out1, ref1), "mismatch vs reference flatten (case 1)"

    # Case 2: batch where B*dims is a multiple of 128 (no-pad, lane-dense path).
    B2 = 16  # 16 * 72 = 1152 = 9 * 128
    x2 = jax.random.normal(jax.random.PRNGKey(1), (B2, 24, 3), dtype=jnp.float32)
    out2 = jax.block_until_ready(embedder(x2))
    ref2 = x2.reshape(B2, embedder.dims)
    assert out2.shape == (B2, embedder.dims), out2.shape
    assert jnp.allclose(out2, ref2), "mismatch vs reference flatten (case 2)"

    # Case 3: bf16 (sublane-packing path, min_sublane=16 / dtype-aware block cap).
    B3 = 32
    x3 = jax.random.normal(jax.random.PRNGKey(2), (B3, 24, 3)).astype(jnp.bfloat16)
    out3 = jax.block_until_ready(embedder(x3))
    ref3 = x3.reshape(B3, embedder.dims)
    assert out3.shape == (B3, embedder.dims), out3.shape
    assert out3.dtype == jnp.bfloat16, out3.dtype
    assert jnp.array_equal(out3, ref3), "mismatch vs reference flatten (case 3)"

    print("KERNEL_OK")
</pallas_src>

<mosaic_0001>
module attributes {stable_mosaic.version = 11 : i64} {
  func.func @_embed_kernel(%arg0: i32, %arg1: memref<8x128xf32, #tpu.memory_space<vmem>>, %arg2: memref<8x128xf32, #tpu.memory_space<vmem>>) attributes {dimension_semantics = [#tpu.dimension_semantics<parallel>], iteration_bounds = array<i64: 1>, scalar_prefetch = 0 : i64, scratch_operands = 0 : i64, tpu.core_type = #tpu.core_type<tc>, window_params = [{transform_indices = @transform_0, window_bounds = array<i64: 8, 128>}, {transform_indices = @transform_1, window_bounds = array<i64: 8, 128>}]} {
    %c0 = arith.constant 0 : index
    %c0_0 = arith.constant 0 : index
    %0 = vector.load %arg1[%c0, %c0_0] : memref<8x128xf32, #tpu.memory_space<vmem>>, vector<8x128xf32>
    %c0_1 = arith.constant 0 : index
    %c0_2 = arith.constant 0 : index
    %1 = vector.load %arg2[%c0_1, %c0_2] : memref<8x128xf32, #tpu.memory_space<vmem>>, vector<8x128xf32>
    tpu.vector_store %arg2[%c0_1, %c0_2], %0 {strides = array<i32>} : memref<8x128xf32, #tpu.memory_space<vmem>>, vector<8x128xf32>,
    return
  }
  func.func @transform_0(%arg0: i32) -> (i32, i32) {
    %c0_i32 = arith.constant 0 : i32
    %c0_i32_0 = arith.constant 0 : i32
    return %arg0, %c0_i32 : i32, i32
  }
  func.func @transform_1(%arg0: i32) -> (i32, i32) {
    %c0_i32 = arith.constant 0 : i32
    %c0_i32_0 = arith.constant 0 : i32
    return %arg0, %c0_i32 : i32, i32
  }
}

</mosaic_0001>

<bundles_post_ra>
// kernel: tpu_custom_call.1
= control target key start
LH: loop header
LB: loop body
LE: loop exit
PB: predicated region body
PF: predicated region fallthrough
CT: control target
= control target key end

     0   :  { %6 = vsyncpa [#allocation3], 0  ;;  %s124_s0 = inlined_call_operand.hbm [shape: f32[8,128], index: 0, kind: input, shape index: {}, may-alias: {0,1}]   ;;  %s125_s1 = inlined_call_operand.hbm [shape: f32[8,128], index: 1, kind: output, shape index: {}, may-alias: {0,1}]  }
   0x1   :  { %7 = vsyncpa [#allocation4], 0  ;;  %s88_s6 = smov [#allocation2]   ;;  %s40_s10 = scalar_lea.hbm %s124_s0, 128 }
   0x2   :  { %s14_s7 = sshll.u32 %s88_s6, 4  ;;  %p41_p0 = scmp.ne.s32.totalorder %s124_s0, %s40_s10  ;;  %s15_s7 = int_to_ptr.vmem [resolvable:$true] %s14_s7 }
   0x3   :  { %p44_p1 = scmp.lt.u32.totalorder %s40_s10, %s124_s0 }
   0x5   :  { %p46_p2 = pnand %p44_p1, %p41_p0 }
   0x7   :  { %49 = shalt.err (!%p46_p2)
}
   0x8   :  { %s50_s15 = scalar_lea.vmem %s15_s7, 128  ;;  %p55_p4 = scmp.lt.s32.totalorder %s15_s7, %s15_s7 }
   0x9   :  { %p51_p3 = scmp.ne.s32.totalorder %s15_s7, %s50_s15  ;;  %p56_p5 = scmp.lt.s32.totalorder %s50_s15, %s50_s15 }
   0xb   :  { %p57_p6 = por %p56_p5, %p55_p4 }
   0xd   :  { %p58_p7 = pnand %p57_p6, %p51_p3 }
   0xf   :  { %61 = shalt.err (!%p58_p7)
}
  0x10   :  { %17 = dma.hbm_to_vmem [thread:$0]  %s124_s0, 128, %s15_s7, [#allocation3]  }
  0x11   :  { %84 = dma.done.wait [#allocation3], 128  }
  0x12   :  { %85 = vsyncadd [#allocation3], 4294967168  ;;  %s89_s18 = smov [#allocation5]   ;;  %v21_v0 = vld [vmem:[#allocation2] sm:$0xff] }
  0x13   :  { %s29_s19 = sshll.u32 %s89_s18, 4  ;;  %22 = vst [vmem:[#allocation5] sm:$0xff] %v21_v0  ;;  %s30_s19 = int_to_ptr.vmem [resolvable:$true] %s29_s19 }
  0x14   :  { %s62_s20 = scalar_lea.vmem %s30_s19, 128  ;;  %p67_p9 = scmp.lt.s32.totalorder %s30_s19, %s30_s19 }
  0x15   :  { %p63_p8 = scmp.ne.s32.totalorder %s30_s19, %s62_s20  ;;  %p68_p10 = scmp.lt.s32.totalorder %s62_s20, %s62_s20 }
  0x17   :  { %p69_p11 = por %p68_p10, %p67_p9 }
  0x19   :  { %p70_p12 = pnand %p69_p11, %p63_p8 }
  0x1b   :  { %73 = shalt.err (!%p70_p12)
}
  0x1c   :  { %s74_s23 = scalar_lea.hbm %s125_s1, 128 }
  0x1d   :  { %p75_p13 = scmp.ne.s32.totalorder %s125_s1, %s74_s23  ;;  %p78_p0 = scmp.lt.u32.totalorder %s74_s23, %s125_s1 }
  0x1f   :  { %p80_p1 = pnand %p78_p0, %p75_p13 }
  0x21   :  { %83 = shalt.err (!%p80_p1)
}
  0x22   :  { %32 = dma.vmem_to_hbm [thread:$0]  %s30_s19, 128, %s125_s1, [#allocation4]  }
  0x23   :  { %86 = dma.done.wait [#allocation4], 128  }
  0x24   :  { %87 = vsyncadd [#allocation4], 4294967168 }
  0x25   :  { %36 = vsyncpa [#allocation3], 1 }
  0x26   :  { %37 = vsyncpa [#allocation4], 1 }

</bundles_post_ra>
